<compile_context>
chip_gen: v7x
topology: tpu7x:2x2x1
jax: 0.10.0
libtpu: 0.0.40
codegen_flags: <defaults>
</compile_context>

<pallas_src>
import functools

import jax
import jax.numpy as jnp
from jax.experimental import pallas as pl
from jax.experimental.pallas import tpu as pltpu


def _round_up(x, m):
    return (x + m - 1) // m * m


def _ffn_kernel(x_ref, w1_ref, b1_ref, w2_ref, b2_ref, o_ref, acc_ref):
    # Grid = (row_tiles, d_ff_tiles); axis 1 is the d_ff reduction.
    # x_ref: (tm, d_model)  w1_ref: (d_model, tk)  b1_ref: (1, tk) f32
    # w2_ref: (tk, d_model) b2_ref: (1, d_model) f32
    # o_ref: (tm, d_model)  acc_ref: (tm, d_model) f32 VMEM scratch
    k = pl.program_id(1)

    @pl.when(k == 0)
    def _():
        # Fold the output bias into the accumulator init (saves one VPU pass).
        acc_ref[...] = jnp.broadcast_to(b2_ref[...], acc_ref.shape)

    # First GEMM for this d_ff chunk (MXU, f32 accumulation).
    h = jnp.dot(x_ref[...], w1_ref[...], preferred_element_type=jnp.float32)
    h = jnp.maximum(h + b1_ref[...], 0.0)          # bias + ReLU (VPU, f32)
    # Dropout: identity in eval mode.

    # Second GEMM, accumulated across d_ff chunks in f32.
    acc_ref[...] += jnp.dot(h.astype(w2_ref.dtype), w2_ref[...],
                            preferred_element_type=jnp.float32)

    @pl.when(k == pl.num_programs(1) - 1)
    def _():
        o_ref[...] = acc_ref[...].astype(o_ref.dtype)


@functools.partial(jax.jit, static_argnames=("tm", "tk", "compute_dtype"))
def positionwise_ffn(x, w1, b1, w2, b2, *, tm=256, tk=512,
                     compute_dtype=jnp.bfloat16):
    """x: (..., d_model). w1: (d_model, d_ff), w2: (d_ff, d_model) (pre-transposed
    vs. torch.nn.Linear). Returns the same shape/dtype as x."""
    orig_shape = x.shape
    orig_dtype = x.dtype
    d_model = orig_shape[-1]
    d_ff = w1.shape[1]

    x2d = x.reshape(-1, d_model)
    n = x2d.shape[0]

    # Tile sizes: multiples of 8 / 128, clamped to the (padded) problem size.
    tm = _round_up(min(tm, _round_up(n, 8)), 8)
    tk = _round_up(min(tk, _round_up(d_ff, 128)), 128)

    n_pad = _round_up(n, tm)
    f_pad = _round_up(d_ff, tk)
    if n_pad != n:
        x2d = jnp.pad(x2d, ((0, n_pad - n), (0, 0)))
    if f_pad != d_ff:
        w1 = jnp.pad(w1, ((0, 0), (0, f_pad - d_ff)))
        b1 = jnp.pad(b1, (0, f_pad - d_ff))
        w2 = jnp.pad(w2, ((0, f_pad - d_ff), (0, 0)))

    # Cast matmul operands once here (bf16 on v6e/v7x); biases stay f32.
    x_c = x2d.astype(compute_dtype)
    w1_c = w1.astype(compute_dtype)
    w2_c = w2.astype(compute_dtype)
    b1_2d = b1.reshape(1, f_pad).astype(jnp.float32)
    b2_2d = b2.reshape(1, d_model).astype(jnp.float32)

    grid = (n_pad // tm, f_pad // tk)

    cost = pl.CostEstimate(
        flops=4 * n_pad * d_model * f_pad,                  # two GEMMs
        transcendentals=0,
        bytes_accessed=(x_c.size * x_c.dtype.itemsize
                        + w1_c.size * w1_c.dtype.itemsize
                        + w2_c.size * w2_c.dtype.itemsize
                        + b1_2d.size * 4 + b2_2d.size * 4
                        + n_pad * d_model * orig_dtype.itemsize),
    )

    out2d = pl.pallas_call(
        _ffn_kernel,
        out_shape=jax.ShapeDtypeStruct((n_pad, d_model), orig_dtype),
        grid_spec=pltpu.PrefetchScalarGridSpec(
            num_scalar_prefetch=0,
            grid=grid,
            in_specs=[
                pl.BlockSpec((tm, d_model), lambda i, k: (i, 0)),   # x row tile
                pl.BlockSpec((d_model, tk), lambda i, k: (0, k)),   # W1 chunk
                pl.BlockSpec((1, tk),       lambda i, k: (0, k)),   # b1 chunk
                pl.BlockSpec((tk, d_model), lambda i, k: (k, 0)),   # W2 chunk
                pl.BlockSpec((1, d_model),  lambda i, k: (0, 0)),   # b2
            ],
            out_specs=pl.BlockSpec((tm, d_model), lambda i, k: (i, 0)),
            scratch_shapes=[pltpu.VMEM((tm, d_model), jnp.float32)],
        ),
        compiler_params=pltpu.CompilerParams(
            dimension_semantics=("parallel", "arbitrary"),
            vmem_limit_bytes=48 * 1024 * 1024,
        ),
        cost_estimate=cost,
    )(x_c, w1_c, b1_2d, w2_c, b2_2d)

    return out2d[:n].reshape(orig_shape)


def init_params(key, d_model, d_ff):
    """Deterministic synthetic init (uniform, roughly matching nn.Linear scale)."""
    k1, k2, k3, k4 = jax.random.split(key, 4)
    lim1 = 1.0 / (d_model ** 0.5)
    lim2 = 1.0 / (d_ff ** 0.5)
    w1 = jax.random.uniform(k1, (d_model, d_ff), jnp.float32, -lim1, lim1)
    b1 = jax.random.uniform(k2, (d_ff,), jnp.float32, -lim1, lim1)
    w2 = jax.random.uniform(k3, (d_ff, d_model), jnp.float32, -lim2, lim2)
    b2 = jax.random.uniform(k4, (d_model,), jnp.float32, -lim2, lim2)
    return w1, b1, w2, b2


def _ref_ffn(x, w1, b1, w2, b2, compute_dtype):
    """Pure-JAX reference mirroring the kernel's dtype policy (eval-mode dropout)."""
    h = jnp.dot(x.astype(compute_dtype), w1.astype(compute_dtype),
                preferred_element_type=jnp.float32) + b1
    h = jnp.maximum(h, 0.0)
    o = jnp.dot(h.astype(compute_dtype), w2.astype(compute_dtype),
                preferred_element_type=jnp.float32) + b2
    return o.astype(x.dtype)


if __name__ == "__main__":
    batch, seq, d_model, d_ff = 2, 64, 256, 512

    key = jax.random.PRNGKey(0)
    kx, kp = jax.random.split(key)
    x = jax.random.normal(kx, (batch, seq, d_model), jnp.float32)
    w1, b1, w2, b2 = init_params(kp, d_model, d_ff)

    # 1) Default path: bf16 matmul operands, f32 accumulation.
    out_bf16 = jax.block_until_ready(positionwise_ffn(x, w1, b1, w2, b2))
    ref_bf16 = _ref_ffn(x, w1, b1, w2, b2, jnp.bfloat16)
    assert out_bf16.shape == x.shape and out_bf16.dtype == x.dtype
    assert jnp.allclose(out_bf16, ref_bf16, atol=1e-3, rtol=1e-3)

    # 2) Full f32 path, tight tolerance.
    out_f32 = jax.block_until_ready(
        positionwise_ffn(x, w1, b1, w2, b2, compute_dtype=jnp.float32))
    ref_f32 = _ref_ffn(x, w1, b1, w2, b2, jnp.float32)
    assert jnp.allclose(out_f32, ref_f32, atol=1e-4, rtol=1e-4)

    # 3) Ragged row count (batch*seq not a multiple of the tile) via padding.
    x_rag = jax.random.normal(kx, (3, 5, d_model), jnp.float32)
    out_rag = jax.block_until_ready(
        positionwise_ffn(x_rag, w1, b1, w2, b2, compute_dtype=jnp.float32))
    ref_rag = _ref_ffn(x_rag, w1, b1, w2, b2, jnp.float32)
    assert out_rag.shape == x_rag.shape
    assert jnp.allclose(out_rag, ref_rag, atol=1e-4, rtol=1e-4)

    print("KERNEL_OK")
</pallas_src>

<mosaic_0001>
module attributes {stable_mosaic.version = 11 : i64} {
  func.func @_ffn_kernel(%arg0: i32, %arg1: i32, %arg2: memref<128x256xbf16, #tpu.memory_space<vmem>>, %arg3: memref<256x512xbf16, #tpu.memory_space<vmem>>, %arg4: memref<1x512xf32, #tpu.memory_space<vmem>>, %arg5: memref<512x256xbf16, #tpu.memory_space<vmem>>, %arg6: memref<1x256xf32, #tpu.memory_space<vmem>>, %arg7: memref<128x256xf32, #tpu.memory_space<vmem>>, %arg8: memref<128x256xf32, #tpu.memory_space<vmem>>) attributes {dimension_semantics = [#tpu.dimension_semantics<parallel>, #tpu.dimension_semantics<arbitrary>], iteration_bounds = array<i64: 1, 1>, scalar_prefetch = 0 : i64, scratch_operands = 1 : i64, tpu.core_type = #tpu.core_type<tc>, window_params = [{transform_indices = @transform_0, window_bounds = array<i64: 128, 256>}, {transform_indices = @transform_1, window_bounds = array<i64: 256, 512>}, {transform_indices = @transform_2, window_bounds = array<i64: 1, 512>}, {transform_indices = @transform_3, window_bounds = array<i64: 512, 256>}, {pipeline_mode = #tpu.pipeline_mode<synchronous>, transform_indices = @transform_4, window_bounds = array<i64: 1, 256>}, {transform_indices = @transform_5, window_bounds = array<i64: 128, 256>}]} {
    %c0_i32 = arith.constant 0 : i32
    %0 = arith.cmpi eq, %arg1, %c0_i32 : i32
    %1 = arith.extui %0 : i1 to i32
    %c0_i32_0 = arith.constant 0 : i32
    %2 = arith.cmpi ne, %1, %c0_i32_0 : i32
    scf.if %2 {
      %c0_16 = arith.constant 0 : index
      %c0_17 = arith.constant 0 : index
      %20 = vector.load %arg6[%c0_16, %c0_17] : memref<1x256xf32, #tpu.memory_space<vmem>>, vector<1x256xf32>
      %21 = vector.shape_cast %20 : vector<1x256xf32> to vector<1x256xf32>
      %22 = vector.broadcast %21 : vector<1x256xf32> to vector<128x256xf32>
      %c0_18 = arith.constant 0 : index
      %c0_19 = arith.constant 0 : index
      %23 = vector.load %arg8[%c0_18, %c0_19] : memref<128x256xf32, #tpu.memory_space<vmem>>, vector<128x256xf32>
      tpu.vector_store %arg8[%c0_18, %c0_19], %22 {strides = array<i32>} : memref<128x256xf32, #tpu.memory_space<vmem>>, vector<128x256xf32>,
    } else {
    }
    %c0 = arith.constant 0 : index
    %c0_1 = arith.constant 0 : index
    %3 = vector.load %arg2[%c0, %c0_1] : memref<128x256xbf16, #tpu.memory_space<vmem>>, vector<128x256xbf16>
    %c0_2 = arith.constant 0 : index
    %c0_3 = arith.constant 0 : index
    %4 = vector.load %arg3[%c0_2, %c0_3] : memref<256x512xbf16, #tpu.memory_space<vmem>>, vector<256x512xbf16>
    %cst = arith.constant dense<0.000000e+00> : vector<128x512xf32>
    %5 = tpu.matmul %3, %4, %cst {dimension_numbers = #tpu.dot_dimension_numbers<[1], [0], [0], [1], [0, 0, 1, 1], [], []>} : vector<128x256xbf16>, vector<256x512xbf16>, vector<128x512xf32> -> vector<128x512xf32>
    %c0_4 = arith.constant 0 : index
    %c0_5 = arith.constant 0 : index
    %6 = vector.load %arg4[%c0_4, %c0_5] : memref<1x512xf32, #tpu.memory_space<vmem>>, vector<1x512xf32>
    %7 = vector.broadcast %6 : vector<1x512xf32> to vector<128x512xf32>
    %8 = arith.addf %5, %7 : vector<128x512xf32>
    %cst_6 = arith.constant 0.000000e+00 : f32
    %9 = vector.broadcast %cst_6 : f32 to vector<128x512xf32>
    %10 = arith.maximumf %8, %9 : vector<128x512xf32>
    %c0_7 = arith.constant 0 : index
    %c0_8 = arith.constant 0 : index
    %11 = vector.load %arg8[%c0_7, %c0_8] : memref<128x256xf32, #tpu.memory_space<vmem>>, vector<128x256xf32>
    %12 = arith.truncf %10 : vector<128x512xf32> to vector<128x512xbf16>
    %c0_9 = arith.constant 0 : index
    %c0_10 = arith.constant 0 : index
    %13 = vector.load %arg5[%c0_9, %c0_10] : memref<512x256xbf16, #tpu.memory_space<vmem>>, vector<512x256xbf16>
    %cst_11 = arith.constant dense<0.000000e+00> : vector<128x256xf32>
    %14 = tpu.matmul %12, %13, %cst_11 {dimension_numbers = #tpu.dot_dimension_numbers<[1], [0], [0], [1], [0, 0, 1, 1], [], []>} : vector<128x512xbf16>, vector<512x256xbf16>, vector<128x256xf32> -> vector<128x256xf32>
    %15 = arith.addf %11, %14 : vector<128x256xf32>
    %c0_12 = arith.constant 0 : index
    %c0_13 = arith.constant 0 : index
    %16 = vector.load %arg8[%c0_12, %c0_13] : memref<128x256xf32, #tpu.memory_space<vmem>>, vector<128x256xf32>
    tpu.vector_store %arg8[%c0_12, %c0_13], %15 {strides = array<i32>} : memref<128x256xf32, #tpu.memory_space<vmem>>, vector<128x256xf32>,
    %c0_i32_14 = arith.constant 0 : i32
    %17 = arith.cmpi eq, %arg1, %c0_i32_14 : i32
    %18 = arith.extui %17 : i1 to i32
    %c0_i32_15 = arith.constant 0 : i32
    %19 = arith.cmpi ne, %18, %c0_i32_15 : i32
    scf.if %19 {
      %c0_16 = arith.constant 0 : index
      %c0_17 = arith.constant 0 : index
      %20 = vector.load %arg8[%c0_16, %c0_17] : memref<128x256xf32, #tpu.memory_space<vmem>>, vector<128x256xf32>
      %c0_18 = arith.constant 0 : index
      %c0_19 = arith.constant 0 : index
      %21 = vector.load %arg7[%c0_18, %c0_19] : memref<128x256xf32, #tpu.memory_space<vmem>>, vector<128x256xf32>
      tpu.vector_store %arg7[%c0_18, %c0_19], %20 {strides = array<i32>} : memref<128x256xf32, #tpu.memory_space<vmem>>, vector<128x256xf32>,
    } else {
    }
    return
  }
  func.func @transform_0(%arg0: i32, %arg1: i32) -> (i32, i32) {
    %c0_i32 = arith.constant 0 : i32
    %c0_i32_0 = arith.constant 0 : i32
    return %arg0, %c0_i32 : i32, i32
  }
  func.func @transform_1(%arg0: i32, %arg1: i32) -> (i32, i32) {
    %c0_i32 = arith.constant 0 : i32
    %c0_i32_0 = arith.constant 0 : i32
    return %c0_i32, %arg1 : i32, i32
  }
  func.func @transform_2(%arg0: i32, %arg1: i32) -> (i32, i32) {
    %c0_i32 = arith.constant 0 : i32
    %c0_i32_0 = arith.constant 0 : i32
    return %c0_i32, %arg1 : i32, i32
  }
  func.func @transform_3(%arg0: i32, %arg1: i32) -> (i32, i32) {
    %c0_i32 = arith.constant 0 : i32
    %c0_i32_0 = arith.constant 0 : i32
    return %arg1, %c0_i32 : i32, i32
  }
  func.func @transform_4(%arg0: i32, %arg1: i32) -> (i32, i32) {
    %c0_i32 = arith.constant 0 : i32
    %c0_i32_0 = arith.constant 0 : i32
    %c0_i32_1 = arith.constant 0 : i32
    return %c0_i32, %c0_i32_0 : i32, i32
  }
  func.func @transform_5(%arg0: i32, %arg1: i32) -> (i32, i32) {
    %c0_i32 = arith.constant 0 : i32
    %c0_i32_0 = arith.constant 0 : i32
    return %arg0, %c0_i32 : i32, i32
  }
}

</mosaic_0001>

<bundles_post_ra>
// kernel: positionwise_ffn.1
= control target key start
LH: loop header
LB: loop body
LE: loop exit
PB: predicated region body
PF: predicated region fallthrough
CT: control target
= control target key end

     0   :  { %s2760_s0 = inlined_call_operand.vmem [shape: bf16[128,256], index: 0, kind: input, shape index: {}]   ;;  %s2761_s1 = inlined_call_operand.vmem [shape: bf16[256,512], index: 1, kind: input, shape index: {}]   ;;  %s2762_s2 = inlined_call_operand.vmem [shape: f32[1,512], index: 2, kind: input, shape index: {}]   ;;  %s2763_s3 = inlined_call_operand.vmem [shape: bf16[512,256], index: 3, kind: input, shape index: {}]   ;;  %s2764_s4 = inlined_call_operand.vmem [shape: f32[1,256], index: 4, kind: input, shape index: {}]   ;;  %s2765_s5 = inlined_call_operand.hbm [shape: f32[128,256], index: 5, kind: output, shape index: {}]  }
   0x1   :  { %v1861_v0 = vld [vmem:[%s2761_s1 + $0x4] ss:$16 sps:$4 sm:$0xff]   ;;  %v1863_v1 = vld [vmem:[%s2761_s1] ss:$16 sps:$4 sm:$0xff]   ;;  %v1914_v36 = vld [vmem:[%s2761_s1 + $0xc] ss:$16 sps:$4 sm:$0xff]  }
   0x2   :  { %571 = vmatprep.subr.bf16.mxu1 %v1861_v0  ;;  %v1864_v2 = vld [vmem:[%s2761_s1 + $0x24] ss:$16 sps:$4 sm:$0xff]   ;;  %v1866_v3 = vld [vmem:[%s2761_s1 + $0x20] ss:$16 sps:$4 sm:$0xff]   ;;  %v1912_v40 = vld [vmem:[%s2761_s1 + $0x8] ss:$16 sps:$4 sm:$0xff]  }
   0x3   :  { %572 = vmatpush1.bf16.msra.mxu1 %v1863_v1  ;;  %v1867_v4 = vld [vmem:[%s2761_s1 + $0x44] ss:$16 sps:$4 sm:$0xff]   ;;  %v1869_v5 = vld [vmem:[%s2761_s1 + $0x40] ss:$16 sps:$4 sm:$0xff]   ;;  %v1917_v42 = vld [vmem:[%s2761_s1 + $0x2c] ss:$16 sps:$4 sm:$0xff]  }
   0x4   :  { %573 = vmatprep.subr.bf16.mxu1 %v1864_v2  ;;  %v1870_v6 = vld [vmem:[%s2761_s1 + $0x64] ss:$16 sps:$4 sm:$0xff]   ;;  %v1872_v7 = vld [vmem:[%s2761_s1 + $0x60] ss:$16 sps:$4 sm:$0xff]   ;;  %v1915_v45 = vld [vmem:[%s2761_s1 + $0x28] ss:$16 sps:$4 sm:$0xff]  }
   0x5   :  { %v1873_v8 = vld [vmem:[%s2761_s1 + $0x84] ss:$16 sps:$4 sm:$0xff]   ;;  %v1875_v9 = vld [vmem:[%s2761_s1 + $0x80] ss:$16 sps:$4 sm:$0xff]   ;;  %v1923_v47 = vld [vmem:[%s2761_s1 + $0x4c] ss:$16 sps:$4 sm:$0xff]  }
   0x6   :  { %v1876_v10 = vld [vmem:[%s2761_s1 + $0xa4] ss:$16 sps:$4 sm:$0xff]   ;;  %v1878_v11 = vld [vmem:[%s2761_s1 + $0xa0] ss:$16 sps:$4 sm:$0xff]   ;;  %v1921_v48 = vld [vmem:[%s2761_s1 + $0x48] ss:$16 sps:$4 sm:$0xff]  }
   0x7   :  { %574 = vmatpush1.bf16.msra.mxu1 %v1866_v3  ;;  %v1879_v12 = vld [vmem:[%s2761_s1 + $0xc4] ss:$16 sps:$4 sm:$0xff]   ;;  %v1881_v14 = vld [vmem:[%s2761_s1 + $0xc0] ss:$16 sps:$4 sm:$0xff]   ;;  %v1926_v50 = vld [vmem:[%s2761_s1 + $0x6c] ss:$16 sps:$4 sm:$0xff]  }
   0x8   :  { %575 = vmatprep.subr.bf16.mxu1 %v1867_v4  ;;  %v2176_v13 = vld [vmem:[%s2760_s0 + $0x4] ss:$8 sps:$4 sm:$0xff]   ;;  %v1884_v16 = vld [vmem:[%s2761_s1 + $0xe0] ss:$16 sps:$4 sm:$0xff]   ;;  %v1984_v34 = vld [vmem:[%s2763_s3 + $0x14] ss:$8 sps:$4 sm:$0xff]  }
   0x9   :  { %v1882_v15 = vld [vmem:[%s2761_s1 + $0xe4] ss:$16 sps:$4 sm:$0xff]   ;;  %603 = vmatprep.mubr.bf16.mxu1 %v2176_v13  ;;  %v1887_v18 = vld [vmem:[%s2761_s1 + $0x100] ss:$16 sps:$4 sm:$0xff]   ;;  %v1924_v55 = vld [vmem:[%s2761_s1 + $0x68] ss:$16 sps:$4 sm:$0xff]  }
   0xa   :  { %v1885_v17 = vld [vmem:[%s2761_s1 + $0x104] ss:$16 sps:$4 sm:$0xff]   ;;  %v1890_v20 = vld [vmem:[%s2761_s1 + $0x120] ss:$16 sps:$4 sm:$0xff]   ;;  %v1932_v56 = vld [vmem:[%s2761_s1 + $0x8c] ss:$16 sps:$4 sm:$0xff]  }
   0xb   :  { %576 = vmatpush1.bf16.msra.mxu1 %v1869_v5  ;;  %v1888_v19 = vld [vmem:[%s2761_s1 + $0x124] ss:$16 sps:$4 sm:$0xff]   ;;  %v1893_v22 = vld [vmem:[%s2761_s1 + $0x140] ss:$16 sps:$4 sm:$0xff]   ;;  %v1930_v60 = vld [vmem:[%s2761_s1 + $0x88] ss:$16 sps:$4 sm:$0xff]  }
   0xc   :  { %577 = vmatprep.subr.bf16.mxu1 %v1870_v6  ;;  %v1891_v21 = vld [vmem:[%s2761_s1 + $0x144] ss:$16 sps:$4 sm:$0xff]   ;;  %v1896_v24 = vld [vmem:[%s2761_s1 + $0x160] ss:$16 sps:$4 sm:$0xff]   ;;  %v1935_v62 = vld [vmem:[%s2761_s1 + $0xac] ss:$16 sps:$4 sm:$0xff]  }
   0xd   :  { %v1894_v23 = vld [vmem:[%s2761_s1 + $0x164] ss:$16 sps:$4 sm:$0xff]   ;;  %v1899_v26 = vld [vmem:[%s2761_s1 + $0x180] ss:$16 sps:$4 sm:$0xff]   ;;  %v1933_v1 = vld [vmem:[%s2761_s1 + $0xa8] ss:$16 sps:$4 sm:$0xff]  }
   0xe   :  { %v1897_v25 = vld [vmem:[%s2761_s1 + $0x184] ss:$16 sps:$4 sm:$0xff]   ;;  %v1902_v28 = vld [vmem:[%s2761_s1 + $0x1a0] ss:$16 sps:$4 sm:$0xff]   ;;  %v1941_v2 = vld [vmem:[%s2761_s1 + $0xcc] ss:$16 sps:$4 sm:$0xff]  }
   0xf   :  { %578 = vmatpush1.bf16.msra.mxu1 %v1872_v7  ;;  %v1900_v27 = vld [vmem:[%s2761_s1 + $0x1a4] ss:$16 sps:$4 sm:$0xff]   ;;  %v1905_v30 = vld [vmem:[%s2761_s1 + $0x1c0] ss:$16 sps:$4 sm:$0xff]  }
  0x10   :  { %579 = vmatprep.subr.bf16.mxu1 %v1873_v8  ;;  %v1903_v29 = vld [vmem:[%s2761_s1 + $0x1c4] ss:$16 sps:$4 sm:$0xff]   ;;  %v1983_v33 = vld [vmem:[%s2763_s3] ss:$8 sps:$4 sm:$0xff]   ;;  %v1986_v37 = vld [vmem:[%s2763_s3 + $0x10] ss:$8 sps:$4 sm:$0xff]  }
  0x11   :  { %v1906_v31 = vld [vmem:[%s2761_s1 + $0x1e4] ss:$16 sps:$4 sm:$0xff]   ;;  %v1908_v35 = vld [vmem:[%s2761_s1 + $0x1e0] ss:$16 sps:$4 sm:$0xff]  }
  0x12   :  { %v1981_v32 = vld [vmem:[%s2763_s3 + $0x4] ss:$8 sps:$4 sm:$0xff]   ;;  %v2254_v38 = vld [vmem:[%s2760_s0] ss:$8 sps:$4 sm:$0xff]   ;;  %v2265_v41 = vld [vmem:[%s2760_s0 + $0x14] ss:$8 sps:$4 sm:$0xff]  }
  0x13   :  { %580 = vmatpush1.bf16.msra.mxu1 %v1875_v9  ;;  %1309 = vmatprep.subr.bf16.mxu0 %v1981_v32  ;;  %v1987_v39 = vld [vmem:[%s2763_s3 + $0x24] ss:$8 sps:$4 sm:$0xff]   ;;  %v1989_v43 = vld [vmem:[%s2763_s3 + $0x20] ss:$8 sps:$4 sm:$0xff]   ;;  %v1990_v44 = vld [vmem:[%s2763_s3 + $0x34] ss:$8 sps:$4 sm:$0xff]  }
  0x14   :  { %581 = vmatprep.subr.bf16.mxu1 %v1876_v10  ;;  %1310 = vmatpush1.bf16.msra.mxu0 %v1983_v33  ;;  %v2284_v46 = vld [vmem:[%s2760_s0 + $0x10] ss:$8 sps:$4 sm:$0xff]   ;;  %v1993_v51 = vld [vmem:[%s2763_s3 + $0x44] ss:$8 sps:$4 sm:$0xff]   ;;  %v1995_v53 = vld [vmem:[%s2763_s3 + $0x40] ss:$8 sps:$4 sm:$0xff]  }
  0x15   :  { %1311 = vmatprep.subr.bf16.mxu0 %v1984_v34  ;;  %v1992_v49 = vld [vmem:[%s2763_s3 + $0x30] ss:$8 sps:$4 sm:$0xff]   ;;  %v2304_v52 = vld [vmem:[%s2760_s0 + $0x24] ss:$8 sps:$4 sm:$0xff]   ;;  %v1996_v54 = vld [vmem:[%s2763_s3 + $0x54] ss:$8 sps:$4 sm:$0xff]  }
  0x16   :  { %v1998_v57 = vld [vmem:[%s2763_s3 + $0x50] ss:$8 sps:$4 sm:$0xff]   ;;  %v2326_v58 = vld [vmem:[%s2760_s0 + $0x20] ss:$8 sps:$4 sm:$0xff]   ;;  %v1999_v59 = vld [vmem:[%s2763_s3 + $0x64] ss:$8 sps:$4 sm:$0xff]  }
  0x17   :  { %582 = vmatpush1.bf16.msra.mxu1 %v1878_v11  ;;  %v2337_v61 = vld [vmem:[%s2760_s0 + $0x34] ss:$8 sps:$4 sm:$0xff]   ;;  %v2001_v63 = vld [vmem:[%s2763_s3 + $0x60] ss:$8 sps:$4 sm:$0xff]  }
  0x18   :  { %583 = vmatprep.subr.bf16.mxu1 %v1879_v12  ;;  %1312 = vmatpush1.bf16.msra.mxu0 %v1986_v37  ;;  %v2002_v0 = vld [vmem:[%s2763_s3 + $0x74] ss:$8 sps:$4 sm:$0xff]  }
  0x19   :  { %1313 = vmatprep.subr.bf16.mxu0 %v1987_v39 }
  0x1b   :  { %584 = vmatpush1.bf16.msra.mxu1 %v1881_v14 }
  0x1c   :  { %585 = vmatprep.subr.bf16.mxu1 %v1882_v15  ;;  %1314 = vmatpush1.bf16.msra.mxu0 %v1989_v43 }
  0x1d   :  { %1315 = vmatprep.subr.bf16.mxu0 %v1990_v44 }
  0x1f   :  { %586 = vmatpush1.bf16.msra.mxu1 %v1884_v16 }
  0x20   :  { %587 = vmatprep.subr.bf16.mxu1 %v1885_v17  ;;  %1316 = vmatpush1.bf16.msra.mxu0 %v1992_v49 }
  0x21   :  { %1317 = vmatprep.subr.bf16.mxu0 %v1993_v51 }
  0x23   :  { %588 = vmatpush1.bf16.msra.mxu1 %v1887_v18 }
  0x24   :  { %589 = vmatprep.subr.bf16.mxu1 %v1888_v19  ;;  %1318 = vmatpush1.bf16.msra.mxu0 %v1995_v53 }
  0x25   :  { %1319 = vmatprep.subr.bf16.mxu0 %v1996_v54 }
  0x27   :  { %590 = vmatpush1.bf16.msra.mxu1 %v1890_v20 }
  0x28   :  { %591 = vmatprep.subr.bf16.mxu1 %v1891_v21  ;;  %1320 = vmatpush1.bf16.msra.mxu0 %v1998_v57 }
  0x29   :  { %1321 = vmatprep.subr.bf16.mxu0 %v1999_v59 }
  0x2b   :  { %592 = vmatpush1.bf16.msra.mxu1 %v1893_v22 }
  0x2c   :  { %593 = vmatprep.subr.bf16.mxu1 %v1894_v23 }
  0x2f   :  { %594 = vmatpush1.bf16.msra.mxu1 %v1896_v24 }
  0x30   :  { %595 = vmatprep.subr.bf16.mxu1 %v1897_v25 }
  0x33   :  { %596 = vmatpush1.bf16.msra.mxu1 %v1899_v26 }
  0x34   :  { %597 = vmatprep.subr.bf16.mxu1 %v1900_v27 }
  0x37   :  { %598 = vmatpush1.bf16.msra.mxu1 %v1902_v28 }
  0x38   :  { %599 = vmatprep.subr.bf16.mxu1 %v1903_v29 }
  0x3b   :  { %600 = vmatpush1.bf16.msra.mxu1 %v1905_v30 }
  0x3c   :  { %601 = vmatprep.subr.bf16.mxu1 %v1906_v31 }
  0x3f   :  { %602 = vmatpush1.bf16.msra.mxu1 %v1908_v35 }
  0x40   :  { %684 = vmatprep.subr.bf16.mxu1 %v1914_v36 }
  0x42   :  { %604 = vmatmul.mubr.bf16.vlgmr.msra.gmra.mrb[0].mxu1 %v2254_v38 }
  0x43   :  { %685 = vmatpush1.bf16.msra.mxu1 %v1912_v40  ;;  %613 = vmatprep.mubr.bf16.mxu1 %v2265_v41 }
  0x44   :  { %686 = vmatprep.subr.bf16.mxu1 %v1917_v42 }
  0x47   :  { %687 = vmatpush1.bf16.msra.mxu1 %v1915_v45 }
  0x48   :  { %688 = vmatprep.subr.bf16.mxu1 %v1923_v47 }
  0x4a   :  { %614 = vmatmul.mubr.bf16.gmra.mrb[4].mxu1 %v2284_v46 }
  0x4b   :  { %689 = vmatpush1.bf16.msra.mxu1 %v1921_v48  ;;  %623 = vmatprep.mubr.bf16.mxu1 %v2304_v52 }
  0x4c   :  { %690 = vmatprep.subr.bf16.mxu1 %v1926_v50 }
  0x4f   :  { %691 = vmatpush1.bf16.msra.mxu1 %v1924_v55 }
  0x50   :  { %692 = vmatprep.subr.bf16.mxu1 %v1932_v56 }
  0x52   :  { %624 = vmatmul.mubr.bf16.gmra.mrb[8].mxu1 %v2326_v58 }
  0x53   :  { %693 = vmatpush1.bf16.msra.mxu1 %v1930_v60  ;;  %633 = vmatprep.mubr.bf16.mxu1 %v2337_v61 }
  0x54   :  { %694 = vmatprep.subr.bf16.mxu1 %v1935_v62 }
  0x55   :  { %10 = vsyncpa [#allocation4], 0  ;;  %1322 = vmatpush1.bf16.msra.mxu0 %v2001_v63  ;;  %v2004_v3 = vld [vmem:[%s2763_s3 + $0x70] ss:$8 sps:$4 sm:$0xff]   ;;  %v2005_v5 = vld [vmem:[%s2763_s3 + $0x84] ss:$8 sps:$4 sm:$0xff]   ;;  %v27_v49 = vlaneseq }
  0x56   :  { %v2362_v4 = vld [vmem:[%s2760_s0 + $0x30] ss:$8 sps:$4 sm:$0xff]   ;;  %1323 = vmatprep.subr.bf16.mxu0 %v2002_v0  ;;  %v2373_v7 = vld [vmem:[%s2760_s0 + $0x44] ss:$8 sps:$4 sm:$0xff]   ;;  %v2007_v9 = vld [vmem:[%s2763_s3 + $0x80] ss:$8 sps:$4 sm:$0xff]  }
  0x57   :  { %695 = vmatpush1.bf16.msra.mxu1 %v1933_v1  ;;  %v1939_v6 = vld [vmem:[%s2761_s1 + $0xc8] ss:$16 sps:$4 sm:$0xff]   ;;  %v1944_v8 = vld [vmem:[%s2761_s1 + $0xec] ss:$16 sps:$4 sm:$0xff]   ;;  %v2521_v50 = vshrl.u32 %v27_v49, 7 }
  0x58   :  { %696 = vmatprep.subr.bf16.mxu1 %v1941_v2  ;;  %v2008_v10 = vld [vmem:[%s2763_s3 + $0x94] ss:$8 sps:$4 sm:$0xff]   ;;  %v1942_v11 = vld [vmem:[%s2761_s1 + $0xe8] ss:$16 sps:$4 sm:$0xff]   ;;  %v2011_v16 = vld [vmem:[%s2763_s3 + $0xa4] ss:$8 sps:$4 sm:$0xff]  }
  0x59   :  { %1324 = vmatpush1.bf16.msra.mxu0 %v2004_v3  ;;  %v1950_v12 = vld [vmem:[%s2761_s1 + $0x10c] ss:$16 sps:$4 sm:$0xff]   ;;  %v2010_v14 = vld [vmem:[%s2763_s3 + $0x90] ss:$8 sps:$4 sm:$0xff]   ;;  %v2398_v15 = vld [vmem:[%s2760_s0 + $0x40] ss:$8 sps:$4 sm:$0xff]  }
  0x5a   :  { %634 = vmatmul.mubr.bf16.gmra.mrb[12].mxu1 %v2362_v4  ;;  %1325 = vmatprep.subr.bf16.mxu0 %v2005_v5  ;;  %v1948_v17 = vld [vmem:[%s2761_s1 + $0x108] ss:$16 sps:$4 sm:$0xff]   ;;  %v2409_v18 = vld [vmem:[%s2760_s0 + $0x54] ss:$8 sps:$4 sm:$0xff]   ;;  %v2017_v26 = vld [vmem:[%s2763_s3 + $0xc4] ss:$8 sps:$4 sm:$0xff]  }
  0x5b   :  { %697 = vmatpush1.bf16.msra.mxu1 %v1939_v6  ;;  %643 = vmatprep.mubr.bf16.mxu1 %v2373_v7  ;;  %v1953_v19 = vld [vmem:[%s2761_s1 + $0x12c] ss:$16 sps:$4 sm:$0xff]   ;;  %v2013_v20 = vld [vmem:[%s2763_s3 + $0xa0] ss:$8 sps:$4 sm:$0xff]   ;;  %v2016_v24 = vld [vmem:[%s2763_s3 + $0xb0] ss:$8 sps:$4 sm:$0xff]  }
  0x5c   :  { %698 = vmatprep.subr.bf16.mxu1 %v1944_v8  ;;  %v2014_v21 = vld [vmem:[%s2763_s3 + $0xb4] ss:$8 sps:$4 sm:$0xff]   ;;  %v1951_v22 = vld [vmem:[%s2761_s1 + $0x128] ss:$16 sps:$4 sm:$0xff]   ;;  %v1963_v28 = vld [vmem:[%s2760_s0 + $0x64] ss:$8 sps:$4 sm:$0xff]  }
  0x5d   :  { %1326 = vmatpush1.bf16.msra.mxu0 %v2007_v9  ;;  %v1959_v23 = vld [vmem:[%s2761_s1 + $0x14c] ss:$16 sps:$4 sm:$0xff]   ;;  %v2434_v25 = vld [vmem:[%s2760_s0 + $0x50] ss:$8 sps:$4 sm:$0xff]   ;;  %v2019_v30 = vld [vmem:[%s2763_s3 + $0xc0] ss:$8 sps:$4 sm:$0xff]  }
  0x5e   :  { %1327 = vmatprep.subr.bf16.mxu0 %v2008_v10  ;;  %v1957_v27 = vld [vmem:[%s2761_s1 + $0x148] ss:$16 sps:$4 sm:$0xff]   ;;  %v1962_v29 = vld [vmem:[%s2761_s1 + $0x16c] ss:$16 sps:$4 sm:$0xff]   ;;  %v29_v51 = vsub.s32 0, %v2521_v50  ;;  %v33_v53 = vsub.s32 1, %v2521_v50 }
  0x5f   :  { %699 = vmatpush1.bf16.msra.mxu1 %v1942_v11  ;;  %v2020_v31 = vld [vmem:[%s2763_s3 + $0xd4] ss:$8 sps:$4 sm:$0xff]   ;;  %v1960_v32 = vld [vmem:[%s2761_s1 + $0x168] ss:$16 sps:$4 sm:$0xff]   ;;  %v2031_v48 = vld [vmem:[%s2763_s3 + $0x104] ss:$8 sps:$4 sm:$0xff]  }
  0x60   :  { %700 = vmatprep.subr.bf16.mxu1 %v1950_v12  ;;  %v1968_v33 = vld [vmem:[%s2761_s1 + $0x18c] ss:$16 sps:$4 sm:$0xff]   ;;  %v1965_v34 = vld [vmem:[%s2760_s0 + $0x60] ss:$8 sps:$4 sm:$0xff]   ;;  %v1974_v42 = vld [vmem:[%s2760_s0 + $0x70] ss:$8 sps:$4 sm:$0xff]  }
  0x61   :  { %1328 = vmatpush1.bf16.msra.mxu0 %v2010_v14  ;;  %v1966_v35 = vld [vmem:[%s2761_s1 + $0x188] ss:$16 sps:$4 sm:$0xff]   ;;  %v1972_v36 = vld [vmem:[%s2760_s0 + $0x74] ss:$8 sps:$4 sm:$0xff]  }
  0x62   :  { %644 = vmatmul.mubr.bf16.gmra.mrb[16].mxu1 %v2398_v15  ;;  %1329 = vmatprep.subr.bf16.mxu0 %v2011_v16  ;;  %v1971_v37 = vld [vmem:[%s2761_s1 + $0x1ac] ss:$16 sps:$4 sm:$0xff]   ;;  %v1969_v39 = vld [vmem:[%s2761_s1 + $0x1a8] ss:$16 sps:$4 sm:$0xff]  }
  0x63   :  { %701 = vmatpush1.bf16.msra.mxu1 %v1948_v17  ;;  %653 = vmatprep.mubr.bf16.mxu1 %v2409_v18  ;;  %v1977_v40 = vld [vmem:[%s2761_s1 + $0x1cc] ss:$16 sps:$4 sm:$0xff]   ;;  %v1975_v43 = vld [vmem:[%s2761_s1 + $0x1c8] ss:$16 sps:$4 sm:$0xff]  }
  0x64   :  { %702 = vmatprep.subr.bf16.mxu1 %v1953_v19  ;;  %v1980_v44 = vld [vmem:[%s2761_s1 + $0x1ec] ss:$16 sps:$4 sm:$0xff]   ;;  %v1978_v45 = vld [vmem:[%s2761_s1 + $0x1e8] ss:$16 sps:$4 sm:$0xff]  }
  0x65   :  { %1330 = vmatpush1.bf16.msra.mxu0 %v2013_v20  ;;  %v2022_v47 = vld [vmem:[%s2763_s3 + $0xd0] ss:$8 sps:$4 sm:$0xff]   ;;  %v2034_v10 = vld [vmem:[%s2763_s3 + $0x114] ss:$8 sps:$4 sm:$0xff]   ;;  %v2037_v20 = vld [vmem:[%s2763_s3 + $0x124] ss:$8 sps:$4 sm:$0xff]  }
  0x66   :  { %1331 = vmatprep.subr.bf16.mxu0 %v2014_v21  ;;  %v2032_v17 = vld [vmem:[%s2763_s3 + $0x110] ss:$8 sps:$4 sm:$0xff]  }
  0x67   :  { %703 = vmatpush1.bf16.msra.mxu1 %v1951_v22 }
  0x68   :  { %704 = vmatprep.subr.bf16.mxu1 %v1959_v23 }
  0x69   :  { %1332 = vmatpush1.bf16.msra.mxu0 %v2016_v24 }
  0x6a   :  { %654 = vmatmul.mubr.bf16.gmra.mrb[20].mxu1 %v2434_v25  ;;  %1333 = vmatprep.subr.bf16.mxu0 %v2017_v26  ;;  %v2035_v26 = vld [vmem:[%s2763_s3 + $0x120] ss:$8 sps:$4 sm:$0xff]  }
  0x6b   :  { %705 = vmatpush1.bf16.msra.mxu1 %v1957_v27  ;;  %663 = vmatprep.mubr.bf16.mxu1 %v1963_v28 }
  0x6c   :  { %706 = vmatprep.subr.bf16.mxu1 %v1962_v29  ;;  %v2040_v29 = vld [vmem:[%s2763_s3 + $0x134] ss:$8 sps:$4 sm:$0xff]  }
  0x6d   :  { %1334 = vmatpush1.bf16.msra.mxu0 %v2019_v30 }
  0x6e   :  { %1335 = vmatprep.subr.bf16.mxu0 %v2020_v31 }
  0x6f   :  { %707 = vmatpush1.bf16.msra.mxu1 %v1960_v32 }
  0x70   :  { %708 = vmatprep.subr.bf16.mxu1 %v1968_v33 }
  0x71   :  { %1336 = vmatpush1.bf16.msra.mxu0 %v2022_v47  ;;  %v2041_v47 = vld [vmem:[%s2763_s3 + $0x140] ss:$8 sps:$4 sm:$0xff]  }
  0x72   :  { %664 = vmatmul.mubr.bf16.gmra.mrb[24].mxu1 %v1965_v34 }
  0x73   :  { %709 = vmatpush1.bf16.msra.mxu1 %v1966_v35  ;;  %673 = vmatprep.mubr.bf16.mxu1 %v1972_v36  ;;  %v2038_v35 = vld [vmem:[%s2763_s3 + $0x130] ss:$8 sps:$4 sm:$0xff]  }
  0x74   :  { %710 = vmatprep.subr.bf16.mxu1 %v1971_v37 }
  0x77   :  { %711 = vmatpush1.bf16.msra.mxu1 %v1969_v39  ;;  %v2043_v39 = vld [vmem:[%s2763_s3 + $0x144] ss:$8 sps:$4 sm:$0xff]  }
  0x78   :  { %712 = vmatprep.subr.bf16.mxu1 %v1977_v40 }
  0x7a   :  { %674 = vmatmul.mubr.bf16.gmra.mrb[28].mxu1 %v1974_v42 }
  0x7b   :  { %713 = vmatpush1.bf16.msra.mxu1 %v1975_v43  ;;  %716 = vmatprep.mubr.bf16.mxu1 %v2176_v13  ;;  %v2023_v13 = vld [vmem:[%s2763_s3 + $0xe4] ss:$8 sps:$4 sm:$0xff]  }
  0x7c   :  { %714 = vmatprep.subr.bf16.mxu1 %v1980_v44  ;;  %1337 = vmatprep.subr.bf16.mxu0 %v2023_v13 }
  0x7f   :  { %715 = vmatpush1.bf16.msra.mxu1 %v1978_v45 }
  0x82   :  { %717 = vmatmul.mubr.bf16.vlgmr.msra.gmra.mrb[32].mxu1 %v2254_v38  ;;  %v2025_v38 = vld [vmem:[%s2763_s3 + $0xe0] ss:$8 sps:$4 sm:$0xff]  }
  0x83   :  { %726 = vmatprep.mubr.bf16.mxu1 %v2265_v41  ;;  %1338 = vmatpush1.bf16.msra.mxu0 %v2025_v38  ;;  %v2026_v41 = vld [vmem:[%s2763_s3 + $0xf4] ss:$8 sps:$4 sm:$0xff]  }
  0x84   :  { %1339 = vmatprep.subr.bf16.mxu0 %v2026_v41  ;;  %v2046_v41 = vld [vmem:[%s2763_s3 + $0x154] ss:$8 sps:$4 sm:$0xff]  }
  0x8a   :  { %727 = vmatmul.mubr.bf16.gmra.mrb[36].mxu1 %v2284_v46  ;;  %v2028_v46 = vld [vmem:[%s2763_s3 + $0xf0] ss:$8 sps:$4 sm:$0xff]  }
  0x8b   :  { %736 = vmatprep.mubr.bf16.mxu1 %v2304_v52  ;;  %1340 = vmatpush1.bf16.msra.mxu0 %v2028_v46  ;;  %v2527_v52 = vld [vmem:[%s2762_s2] sm:$0xf] }
  0x8c   :  { %1422 = vmatprep.subr.bf16.mxu0 %v2031_v48  ;;  %v2533_v54 = vrot.slane %v2527_v52, %v29_v51  ;;  %v2538_v55 = vrot.slane %v2527_v52, %v33_v53 }
  0x92   :  { %737 = vmatmul.mubr.bf16.gmra.mrb[40].mxu1 %v2326_v58 }
  0x93   :  { %746 = vmatprep.mubr.bf16.mxu1 %v2337_v61 }
  0x9a   :  { %747 = vmatmul.mubr.bf16.gmra.mrb[44].mxu1 %v2362_v4 }
  0x9b   :  { %756 = vmatprep.mubr.bf16.mxu1 %v2373_v7  ;;  %v2029_v7 = vld [vmem:[%s2763_s3 + $0x100] ss:$8 sps:$4 sm:$0xff]  }
  0xa2   :  { %757 = vmatmul.mubr.bf16.gmra.mrb[48].mxu1 %v2398_v15 }
  0xa3   :  { %766 = vmatprep.mubr.bf16.mxu1 %v2409_v18 }
  0xaa   :  { %767 = vmatmul.mubr.bf16.gmra.mrb[52].mxu1 %v2434_v25 }
  0xab   :  { %776 = vmatprep.mubr.bf16.mxu1 %v1963_v28 }
  0xb2   :  { %777 = vmatmul.mubr.bf16.gmra.mrb[56].mxu1 %v1965_v34 }
  0xb3   :  { %786 = vmatprep.mubr.bf16.mxu1 %v1972_v36 }
  0xba   :  { %787 = vmatmul.mubr.bf16.gmra.mrb[60].mxu1 %v1974_v42 }
 0x115   :  { %v605_v56 = vpop.f32.mrb[0].mxu1 }
 0x116   :  { %v606_v57 = vadd.f32 %v605_v56, %v2533_v54  ;;  %v607_v58 = vpop.f32.mrb[1].mxu1 }
 0x117   :  { %v608_v59 = vadd.f32 %v607_v58, %v2538_v55  ;;  %v609_v60 = vpop.f32.mrb[2].mxu1  ;;  %v2044_v58 = vld [vmem:[%s2763_s3 + $0x150] ss:$8 sps:$4 sm:$0xff]  }
 0x118   :  { %v610_v61 = vadd.f32 %v609_v60, %v2533_v54  ;;  %v611_v62 = vpop.f32.mrb[3].mxu1  ;;  %v797_v0 = vmax.f32 %v606_v57, 0.0 }
 0x119   :  { %v612_v63 = vadd.f32 %v611_v62, %v2538_v55  ;;  %v798_v2 = vmax.f32 %v608_v59, 0.0 }
 0x11a   :  { %v801_v1 = vmax.f32 %v610_v61, 0.0  ;;  %v2049_v61 = vld [vmem:[%s2763_s3 + $0x164] ss:$8 sps:$4 sm:$0xff]  }
 0x11b   :  { %v802_v3 = vmax.f32 %v612_v63, 0.0 }
 0x11c   :  { %v893_v4 = vpack.c.bf16 %v801_v1, %v797_v0 }
 0x11d   :  { %v615_v5 = vpop.f32.mrb[4].mxu1  ;;  %v894_v6 = vpack.c.bf16 %v802_v3, %v798_v2  ;;  %v2047_v3 = vld [vmem:[%s2763_s3 + $0x160] ss:$8 sps:$4 sm:$0xff]  }
 0x11e   :  { %v616_v8 = vadd.f32 %v615_v5, %v2533_v54  ;;  %v617_v9 = vpop.f32.mrb[5].mxu1 }
 0x11f   :  { %v618_v11 = vadd.f32 %v617_v9, %v2538_v55  ;;  %v619_v12 = vpop.f32.mrb[6].mxu1  ;;  %1341 = vmatprep.mubr.bf16.mxu0 %v894_v6  ;;  %v2052_v6 = vld [vmem:[%s2763_s3 + $0x174] ss:$8 sps:$4 sm:$0xff]  }
 0x120   :  { %v620_v14 = vadd.f32 %v619_v12, %v2533_v54  ;;  %v621_v15 = vpop.f32.mrb[7].mxu1  ;;  %1342 = vmatmul.mubr.bf16.vlgmr.msra.gmra.mrb[0].mxu0 %v893_v4  ;;  %v805_v18 = vmax.f32 %v616_v8, 0.0  ;;  %v2050_v12 = vld [vmem:[%s2763_s3 + $0x170] ss:$8 sps:$4 sm:$0xff]  }
 0x121   :  { %v622_v16 = vadd.f32 %v621_v15, %v2538_v55  ;;  %1423 = vmatpush1.bf16.msra.mxu0 %v2029_v7  ;;  %v806_v21 = vmax.f32 %v618_v11, 0.0 }
 0x122   :  { %v809_v19 = vmax.f32 %v620_v14, 0.0  ;;  %1424 = vmatprep.subr.bf16.mxu0 %v2034_v10 }
 0x123   :  { %v810_v22 = vmax.f32 %v622_v16, 0.0  ;;  %v2055_v16 = vld [vmem:[%s2763_s3 + $0x184] ss:$8 sps:$4 sm:$0xff]  }
 0x124   :  { %v897_v23 = vpack.c.bf16 %v809_v19, %v805_v18 }
 0x125   :  { %v898_v24 = vpack.c.bf16 %v810_v22, %v806_v21  ;;  %v625_v25 = vpop.f32.mrb[8].mxu1  ;;  %1425 = vmatpush1.bf16.msra.mxu0 %v2032_v17  ;;  %v2053_v22 = vld [vmem:[%s2763_s3 + $0x180] ss:$8 sps:$4 sm:$0xff]  }
 0x126   :  { %v626_v27 = vadd.f32 %v625_v25, %v2533_v54  ;;  %v627_v28 = vpop.f32.mrb[9].mxu1  ;;  %1426 = vmatprep.subr.bf16.mxu0 %v2037_v20  ;;  %v2058_v25 = vld [vmem:[%s2763_s3 + $0x194] ss:$8 sps:$4 sm:$0xff]  }
 0x127   :  { %v628_v30 = vadd.f32 %v627_v28, %v2538_v55  ;;  %v629_v31 = vpop.f32.mrb[10].mxu1  ;;  %1351 = vmatprep.mubr.bf16.mxu0 %v898_v24 }
 0x128   :  { %v630_v32 = vadd.f32 %v629_v31, %v2533_v54  ;;  %v631_v33 = vpop.f32.mrb[11].mxu1  ;;  %1352 = vmatmul.mubr.bf16.gmra.mrb[4].mxu0 %v897_v23  ;;  %v813_v36 = vmax.f32 %v626_v27, 0.0  ;;  %v2056_v31 = vld [vmem:[%s2763_s3 + $0x190] ss:$8 sps:$4 sm:$0xff]  }
 0x129   :  { %v632_v34 = vadd.f32 %v631_v33, %v2538_v55  ;;  %1427 = vmatpush1.bf16.msra.mxu0 %v2035_v26  ;;  %v814_v40 = vmax.f32 %v628_v30, 0.0 }
 0x12a   :  { %v817_v37 = vmax.f32 %v630_v32, 0.0  ;;  %1428 = vmatprep.subr.bf16.mxu0 %v2040_v29 }
 0x12b   :  { %v818_v42 = vmax.f32 %v632_v34, 0.0  ;;  %v2061_v34 = vld [vmem:[%s2763_s3 + $0x1a4] ss:$8 sps:$4 sm:$0xff]  }
 0x12c   :  { %v901_v43 = vpack.c.bf16 %v817_v37, %v813_v36 }
 0x12d   :  { %v902_v44 = vpack.c.bf16 %v818_v42, %v814_v40  ;;  %v635_v45 = vpop.f32.mrb[12].mxu1  ;;  %1429 = vmatpush1.bf16.msra.mxu0 %v2038_v35  ;;  %v2059_v42 = vld [vmem:[%s2763_s3 + $0x1a0] ss:$8 sps:$4 sm:$0xff]  }
 0x12e   :  { %v636_v13 = vadd.f32 %v635_v45, %v2533_v54  ;;  %v637_v38 = vpop.f32.mrb[13].mxu1  ;;  %1430 = vmatprep.subr.bf16.mxu0 %v2043_v39  ;;  %v2064_v45 = vld [vmem:[%s2763_s3 + $0x1b4] ss:$8 sps:$4 sm:$0xff]  }
 0x12f   :  { %v638_v46 = vadd.f32 %v637_v38, %v2538_v55  ;;  %v639_v48 = vpop.f32.mrb[14].mxu1  ;;  %1361 = vmatprep.mubr.bf16.mxu0 %v902_v44 }
 0x130   :  { %v640_v49 = vadd.f32 %v639_v48, %v2533_v54  ;;  %v641_v56 = vpop.f32.mrb[15].mxu1  ;;  %1362 = vmatmul.mubr.bf16.gmra.mrb[8].mxu0 %v901_v43  ;;  %v821_v59 = vmax.f32 %v636_v13, 0.0  ;;  %v2062_v48 = vld [vmem:[%s2763_s3 + $0x1b0] ss:$8 sps:$4 sm:$0xff]  }
 0x131   :  { %v642_v57 = vadd.f32 %v641_v56, %v2538_v55  ;;  %1431 = vmatpush1.bf16.msra.mxu0 %v2041_v47  ;;  %v822_v62 = vmax.f32 %v638_v46, 0.0 }
 0x132   :  { %v825_v60 = vmax.f32 %v640_v49, 0.0  ;;  %1432 = vmatprep.subr.bf16.mxu0 %v2046_v41 }
 0x133   :  { %v826_v63 = vmax.f32 %v642_v57, 0.0  ;;  %v2067_v57 = vld [vmem:[%s2763_s3 + $0x1c4] ss:$8 sps:$4 sm:$0xff]  }
 0x134   :  { %v905_v0 = vpack.c.bf16 %v825_v60, %v821_v59 }
 0x135   :  { %v906_v1 = vpack.c.bf16 %v826_v63, %v822_v62  ;;  %v645_v2 = vpop.f32.mrb[16].mxu1  ;;  %1433 = vmatpush1.bf16.msra.mxu0 %v2044_v58  ;;  %v2065_v63 = vld [vmem:[%s2763_s3 + $0x1c0] ss:$8 sps:$4 sm:$0xff]  }
 0x136   :  { %v646_v4 = vadd.f32 %v645_v2, %v2533_v54  ;;  %v647_v5 = vpop.f32.mrb[17].mxu1  ;;  %1434 = vmatprep.subr.bf16.mxu0 %v2049_v61  ;;  %v2070_v2 = vld [vmem:[%s2763_s3 + $0x1d4] ss:$8 sps:$4 sm:$0xff]  }
 0x137   :  { %v648_v7 = vadd.f32 %v647_v5, %v2538_v55  ;;  %v649_v8 = vpop.f32.mrb[18].mxu1  ;;  %1371 = vmatprep.mubr.bf16.mxu0 %v906_v1 }
 0x138   :  { %v650_v9 = vadd.f32 %v649_v8, %v2533_v54  ;;  %v651_v10 = vpop.f32.mrb[19].mxu1  ;;  %1372 = vmatmul.mubr.bf16.gmra.mrb[12].mxu0 %v905_v0  ;;  %v829_v14 = vmax.f32 %v646_v4, 0.0 }
 0x139   :  { %v652_v11 = vadd.f32 %v651_v10, %v2538_v55  ;;  %1435 = vmatpush1.bf16.msra.mxu0 %v2047_v3  ;;  %v830_v17 = vmax.f32 %v648_v7, 0.0  ;;  %v161_v3 = vsub.s32 2, %v2521_v50  ;;  %v2068_v10 = vld [vmem:[%s2763_s3 + $0x1d0] ss:$8 sps:$4 sm:$0xff]  }
 0x13a   :  { %v833_v15 = vmax.f32 %v650_v9, 0.0  ;;  %1436 = vmatprep.subr.bf16.mxu0 %v2052_v6  ;;  %v165_v6 = vsub.s32 3, %v2521_v50 }
 0x13b   :  { %v834_v18 = vmax.f32 %v652_v11, 0.0 }
 0x13c   :  { %v909_v19 = vpack.c.bf16 %v833_v15, %v829_v14  ;;  %v2656_v14 = vrot.slane %v2527_v52, %v161_v3  ;;  %v2073_v15 = vld [vmem:[%s2763_s3 + $0x1e4] ss:$8 sps:$4 sm:$0xff]  }
 0x13d   :  { %v910_v20 = vpack.c.bf16 %v834_v18, %v830_v17  ;;  %v655_v21 = vpop.f32.mrb[20].mxu1  ;;  %1437 = vmatpush1.bf16.msra.mxu0 %v2050_v12  ;;  %v2662_v17 = vrot.slane %v2527_v52, %v165_v6 }
 0x13e   :  { %v656_v23 = vadd.f32 %v655_v21, %v2533_v54  ;;  %v657_v24 = vpop.f32.mrb[21].mxu1  ;;  %1438 = vmatprep.subr.bf16.mxu0 %v2055_v16 }
 0x13f   :  { %v658_v26 = vadd.f32 %v657_v24, %v2538_v55  ;;  %v659_v27 = vpop.f32.mrb[22].mxu1  ;;  %1381 = vmatprep.mubr.bf16.mxu0 %v910_v20  ;;  %v2071_v20 = vld [vmem:[%s2763_s3 + $0x1e0] ss:$8 sps:$4 sm:$0xff]  }
 0x140   :  { %v660_v28 = vadd.f32 %v659_v27, %v2533_v54  ;;  %v661_v29 = vpop.f32.mrb[23].mxu1  ;;  %1382 = vmatmul.mubr.bf16.gmra.mrb[16].mxu0 %v909_v19  ;;  %v837_v32 = vmax.f32 %v656_v23, 0.0  ;;  %v2076_v23 = vld [vmem:[%s2763_s3 + $0x1f4] ss:$8 sps:$4 sm:$0xff]  }
 0x141   :  { %v662_v30 = vadd.f32 %v661_v29, %v2538_v55  ;;  %1439 = vmatpush1.bf16.msra.mxu0 %v2053_v22  ;;  %v838_v35 = vmax.f32 %v658_v26, 0.0 }
 0x142   :  { %v841_v33 = vmax.f32 %v660_v28, 0.0  ;;  %1440 = vmatprep.subr.bf16.mxu0 %v2058_v25  ;;  %v2074_v28 = vld [vmem:[%s2763_s3 + $0x1f0] ss:$8 sps:$4 sm:$0xff]  }
 0x143   :  { %v842_v36 = vmax.f32 %v662_v30, 0.0 }
 0x144   :  { %v913_v37 = vpack.c.bf16 %v841_v33, %v837_v32 }
 0x145   :  { %v914_v39 = vpack.c.bf16 %v842_v36, %v838_v35  ;;  %v665_v40 = vpop.f32.mrb[24].mxu1  ;;  %1441 = vmatpush1.bf16.msra.mxu0 %v2056_v31 }
 0x146   :  { %v666_v43 = vadd.f32 %v665_v40, %v2533_v54  ;;  %v667_v44 = vpop.f32.mrb[25].mxu1  ;;  %1442 = vmatprep.subr.bf16.mxu0 %v2061_v34 }
 0x147   :  { %v668_v47 = vadd.f32 %v667_v44, %v2538_v55  ;;  %v669_v13 = vpop.f32.mrb[26].mxu1  ;;  %1391 = vmatprep.mubr.bf16.mxu0 %v914_v39 }
 0x148   :  { %v670_v38 = vadd.f32 %v669_v13, %v2533_v54  ;;  %v671_v41 = vpop.f32.mrb[27].mxu1  ;;  %1392 = vmatmul.mubr.bf16.gmra.mrb[20].mxu0 %v913_v37  ;;  %v845_v49 = vmax.f32 %v666_v43, 0.0 }
 0x149   :  { %v672_v46 = vadd.f32 %v671_v41, %v2538_v55  ;;  %1443 = vmatpush1.bf16.msra.mxu0 %v2059_v42  ;;  %v846_v58 = vmax.f32 %v668_v47, 0.0 }
 0x14a   :  { %v849_v56 = vmax.f32 %v670_v38, 0.0  ;;  %1444 = vmatprep.subr.bf16.mxu0 %v2064_v45 }
 0x14b   :  { %v850_v59 = vmax.f32 %v672_v46, 0.0 }
 0x14c   :  { %v917_v60 = vpack.c.bf16 %v849_v56, %v845_v49 }
 0x14d   :  { %v918_v61 = vpack.c.bf16 %v850_v59, %v846_v58  ;;  %v675_v62 = vpop.f32.mrb[28].mxu1  ;;  %1445 = vmatpush1.bf16.msra.mxu0 %v2062_v48 }
 0x14e   :  { %v676_v0 = vadd.f32 %v675_v62, %v2533_v54  ;;  %v677_v1 = vpop.f32.mrb[29].mxu1  ;;  %1446 = vmatprep.subr.bf16.mxu0 %v2067_v57 }
 0x14f   :  { %v678_v4 = vadd.f32 %v677_v1, %v2538_v55  ;;  %v679_v5 = vpop.f32.mrb[30].mxu1  ;;  %1401 = vmatprep.mubr.bf16.mxu0 %v918_v61 }
 0x150   :  { %v680_v7 = vadd.f32 %v679_v5, %v2533_v54  ;;  %v681_v8 = vpop.f32.mrb[31].mxu1  ;;  %1402 = vmatmul.mubr.bf16.gmra.mrb[24].mxu0 %v917_v60  ;;  %v853_v11 = vmax.f32 %v676_v0, 0.0 }
 0x151   :  { %v682_v9 = vadd.f32 %v681_v8, %v2538_v55  ;;  %1447 = vmatpush1.bf16.msra.mxu0 %v2065_v63  ;;  %v854_v54 = vmax.f32 %v678_v4, 0.0 }
 0x152   :  { %v857_v12 = vmax.f32 %v680_v7, 0.0  ;;  %1448 = vmatprep.subr.bf16.mxu0 %v2070_v2 }
 0x153   :  { %v858_v16 = vmax.f32 %v682_v9, 0.0 }
 0x154   :  { %v921_v55 = vpack.c.bf16 %v857_v12, %v853_v11 }
 0x155   :  { %v922_v18 = vpack.c.bf16 %v858_v16, %v854_v54  ;;  %v718_v19 = vpop.f32.mrb[32].mxu1  ;;  %1449 = vmatpush1.bf16.msra.mxu0 %v2068_v10 }
 0x156   :  { %v719_v21 = vadd.f32 %v718_v19, %v2656_v14  ;;  %v720_v22 = vpop.f32.mrb[33].mxu1  ;;  %1450 = vmatprep.subr.bf16.mxu0 %v2073_v15 }
 0x157   :  { %v721_v24 = vadd.f32 %v720_v22, %v2662_v17  ;;  %v722_v52 = vpop.f32.mrb[34].mxu1  ;;  %1411 = vmatprep.mubr.bf16.mxu0 %v922_v18 }
 0x158   :  { %v723_v25 = vadd.f32 %v722_v52, %v2656_v14  ;;  %v724_v26 = vpop.f32.mrb[35].mxu1  ;;  %1412 = vmatmul.mubr.bf16.gmra.mrb[28].mxu0 %v921_v55  ;;  %v799_v29 = vmax.f32 %v719_v21, 0.0 }
 0x159   :  { %v725_v27 = vadd.f32 %v724_v26, %v2662_v17  ;;  %1451 = vmatpush1.bf16.msra.mxu0 %v2071_v20  ;;  %v800_v31 = vmax.f32 %v721_v24, 0.0 }
 0x15a   :  { %v803_v30 = vmax.f32 %v723_v25, 0.0  ;;  %1452 = vmatprep.subr.bf16.mxu0 %v2076_v23 }
 0x15b   :  { %v804_v32 = vmax.f32 %v725_v27, 0.0 }
 0x15c   :  { %v895_v33 = vpack.c.bf16 %v803_v30, %v799_v29 }
 0x15d   :  { %v896_v34 = vpack.c.bf16 %v804_v32, %v800_v31  ;;  %v728_v35 = vpop.f32.mrb[36].mxu1  ;;  %1453 = vmatpush1.bf16.msra.mxu0 %v2074_v28 }
 0x15e   :  { %v729_v36 = vadd.f32 %v728_v35, %v2656_v14  ;;  %v730_v37 = vpop.f32.mrb[37].mxu1 }
 0x15f   :  { %v731_v39 = vadd.f32 %v730_v37, %v2662_v17  ;;  %v732_v40 = vpop.f32.mrb[38].mxu1  ;;  %1454 = vmatprep.mubr.bf16.mxu0 %v896_v34 }
 0x160   :  { %v733_v42 = vadd.f32 %v732_v40, %v2656_v14  ;;  %v734_v43 = vpop.f32.mrb[39].mxu1  ;;  %1455 = vmatmul.mubr.bf16.vlgmr.msra.gmra.mrb[0].mxu0 %v895_v33  ;;  %v807_v45 = vmax.f32 %v729_v36, 0.0 }
 0x161   :  { %v735_v44 = vadd.f32 %v734_v43, %v2662_v17  ;;  %v808_v13 = vmax.f32 %v731_v39, 0.0 }
 0x162   :  { %v811_v47 = vmax.f32 %v733_v42, 0.0 }
 0x163   :  { %v812_v38 = vmax.f32 %v735_v44, 0.0 }
 0x164   :  { %v899_v41 = vpack.c.bf16 %v811_v47, %v807_v45 }
 0x165   :  { %v900_v46 = vpack.c.bf16 %v812_v38, %v808_v13  ;;  %v738_v48 = vpop.f32.mrb[40].mxu1 }
 0x166   :  { %v739_v49 = vadd.f32 %v738_v48, %v2656_v14  ;;  %v740_v56 = vpop.f32.mrb[41].mxu1 }
 0x167   :  { %v741_v57 = vadd.f32 %v740_v56, %v2662_v17  ;;  %v742_v58 = vpop.f32.mrb[42].mxu1  ;;  %1464 = vmatprep.mubr.bf16.mxu0 %v900_v46 }
 0x168   :  { %v743_v59 = vadd.f32 %v742_v58, %v2656_v14  ;;  %v744_v60 = vpop.f32.mrb[43].mxu1  ;;  %1465 = vmatmul.mubr.bf16.gmra.mrb[4].mxu0 %v899_v41  ;;  %v815_v62 = vmax.f32 %v739_v49, 0.0 }
 0x169   :  { %v745_v61 = vadd.f32 %v744_v60, %v2662_v17  ;;  %v816_v0 = vmax.f32 %v741_v57, 0.0 }
 0x16a   :  { %v819_v63 = vmax.f32 %v743_v59, 0.0 }
 0x16b   :  { %v820_v1 = vmax.f32 %v745_v61, 0.0 }
 0x16c   :  { %v903_v2 = vpack.c.bf16 %v819_v63, %v815_v62 }
 0x16d   :  { %v904_v3 = vpack.c.bf16 %v820_v1, %v816_v0  ;;  %v748_v4 = vpop.f32.mrb[44].mxu1 }
 0x16e   :  { %v749_v5 = vadd.f32 %v748_v4, %v2656_v14  ;;  %v750_v6 = vpop.f32.mrb[45].mxu1 }
 0x16f   :  { %v751_v7 = vadd.f32 %v750_v6, %v2662_v17  ;;  %v752_v8 = vpop.f32.mrb[46].mxu1  ;;  %1474 = vmatprep.mubr.bf16.mxu0 %v904_v3 }
 0x170   :  { %v753_v9 = vadd.f32 %v752_v8, %v2656_v14  ;;  %v754_v10 = vpop.f32.mrb[47].mxu1  ;;  %1475 = vmatmul.mubr.bf16.gmra.mrb[8].mxu0 %v903_v2  ;;  %v823_v12 = vmax.f32 %v749_v5, 0.0 }
 0x171   :  { %v755_v11 = vadd.f32 %v754_v10, %v2662_v17  ;;  %v824_v54 = vmax.f32 %v751_v7, 0.0 }
 0x172   :  { %v827_v15 = vmax.f32 %v753_v9, 0.0 }
 0x173   :  { %v828_v16 = vmax.f32 %v755_v11, 0.0 }
 0x174   :  { %v907_v55 = vpack.c.bf16 %v827_v15, %v823_v12 }
 0x175   :  { %v908_v18 = vpack.c.bf16 %v828_v16, %v824_v54  ;;  %v758_v19 = vpop.f32.mrb[48].mxu1  ;;  %v25_v16 = vld [vmem:[%s2764_s4] sm:$0x3]  ;;  %s2101_s4 = smov [#allocation3]  }
 0x176   :  { %v759_v20 = vadd.f32 %v758_v19, %v2656_v14  ;;  %v760_v21 = vpop.f32.mrb[49].mxu1  ;;  %s1671_s25 = sshll.u32 %s2101_s4, 4  ;;  %s1672_s25 = int_to_ptr.vmem [resolvable:$true] %s1671_s25 }
 0x177   :  { %v761_v22 = vadd.f32 %v760_v21, %v2662_v17  ;;  %v762_v23 = vpop.f32.mrb[50].mxu1  ;;  %1484 = vmatprep.mubr.bf16.mxu0 %v908_v18  ;;  %s2077_s26 = scalar_lea.vmem %s1672_s25, 4096  ;;  %p2082_p1 = scmp.lt.s32.totalorder %s1672_s25, %s1672_s25 }
 0x178   :  { %v763_v24 = vadd.f32 %v762_v23, %v2656_v14  ;;  %v764_v52 = vpop.f32.mrb[51].mxu1  ;;  %1485 = vmatmul.mubr.bf16.gmra.mrb[12].mxu0 %v907_v55  ;;  %v831_v26 = vmax.f32 %v759_v20, 0.0  ;;  %v2710_v55 = vrot.slane %v25_v16, %v29_v51  ;;  %p2078_p0 = scmp.ne.s32.totalorder %s1672_s25, %s2077_s26  ;;  %p2083_p2 = scmp.lt.s32.totalorder %s2077_s26, %s2077_s26 }
 0x179   :  { %v765_v25 = vadd.f32 %v764_v52, %v2662_v17  ;;  %v832_v28 = vmax.f32 %v761_v22, 0.0 }
 0x17a   :  { %v835_v27 = vmax.f32 %v763_v24, 0.0  ;;  %p2084_p3 = por %p2083_p2, %p2082_p1 }
 0x17b   :  { %v836_v29 = vmax.f32 %v765_v25, 0.0 }
 0x17c   :  { %v911_v30 = vpack.c.bf16 %v835_v27, %v831_v26  ;;  %p2085_p4 = pnand %p2084_p3, %p2078_p0 }
 0x17d   :  { %v912_v31 = vpack.c.bf16 %v836_v29, %v832_v28  ;;  %v768_v32 = vpop.f32.mrb[52].mxu1 }
 0x17e   :  { %v769_v33 = vadd.f32 %v768_v32, %v2656_v14  ;;  %v770_v34 = vpop.f32.mrb[53].mxu1 }
 0x17f   :  { %v771_v35 = vadd.f32 %v770_v34, %v2662_v17  ;;  %v772_v36 = vpop.f32.mrb[54].mxu1  ;;  %1494 = vmatprep.mubr.bf16.mxu0 %v912_v31 }
 0x180   :  { %v773_v37 = vadd.f32 %v772_v36, %v2656_v14  ;;  %v774_v39 = vpop.f32.mrb[55].mxu1  ;;  %1495 = vmatmul.mubr.bf16.gmra.mrb[16].mxu0 %v911_v30  ;;  %v839_v42 = vmax.f32 %v769_v33, 0.0 }
 0x181   :  { %v775_v40 = vadd.f32 %v774_v39, %v2662_v17  ;;  %v840_v44 = vmax.f32 %v771_v35, 0.0 }
 0x182   :  { %v843_v43 = vmax.f32 %v773_v37, 0.0 }
 0x183   :  { %v844_v45 = vmax.f32 %v775_v40, 0.0 }
 0x184   :  { %v915_v47 = vpack.c.bf16 %v843_v43, %v839_v42 }
 0x185   :  { %v916_v13 = vpack.c.bf16 %v844_v45, %v840_v44  ;;  %v778_v38 = vpop.f32.mrb[56].mxu1 }
 0x186   :  { %v779_v41 = vadd.f32 %v778_v38, %v2656_v14  ;;  %v780_v46 = vpop.f32.mrb[57].mxu1 }
 0x187   :  { %v781_v48 = vadd.f32 %v780_v46, %v2662_v17  ;;  %v782_v49 = vpop.f32.mrb[58].mxu1  ;;  %1504 = vmatprep.mubr.bf16.mxu0 %v916_v13 }
 0x188   :  { %v783_v56 = vadd.f32 %v782_v49, %v2656_v14  ;;  %v784_v57 = vpop.f32.mrb[59].mxu1  ;;  %1505 = vmatmul.mubr.bf16.gmra.mrb[20].mxu0 %v915_v47  ;;  %v847_v59 = vmax.f32 %v779_v41, 0.0 }
 0x189   :  { %v785_v58 = vadd.f32 %v784_v57, %v2662_v17  ;;  %v848_v61 = vmax.f32 %v781_v48, 0.0 }
 0x18a   :  { %v851_v60 = vmax.f32 %v783_v56, 0.0 }
 0x18b   :  { %v852_v62 = vmax.f32 %v785_v58, 0.0 }
 0x18c   :  { %v919_v63 = vpack.c.bf16 %v851_v60, %v847_v59 }
 0x18d   :  { %v920_v0 = vpack.c.bf16 %v852_v62, %v848_v61  ;;  %v788_v1 = vpop.f32.mrb[60].mxu1 }
 0x18e   :  { %v789_v2 = vadd.f32 %v788_v1, %v2656_v14  ;;  %v790_v3 = vpop.f32.mrb[61].mxu1 }
 0x18f   :  { %v791_v4 = vadd.f32 %v790_v3, %v2662_v17  ;;  %v792_v5 = vpop.f32.mrb[62].mxu1  ;;  %1514 = vmatprep.mubr.bf16.mxu0 %v920_v0 }
 0x190   :  { %v793_v6 = vadd.f32 %v792_v5, %v2656_v14  ;;  %v794_v7 = vpop.f32.mrb[63].mxu1  ;;  %1515 = vmatmul.mubr.bf16.gmra.mrb[24].mxu0 %v919_v63  ;;  %v855_v9 = vmax.f32 %v789_v2, 0.0  ;;  %v2714_v14 = vrot.slane %v25_v16, %v33_v53 }
 0x191   :  { %v795_v8 = vadd.f32 %v794_v7, %v2662_v17  ;;  %v856_v11 = vmax.f32 %v791_v4, 0.0 }
 0x192   :  { %v859_v10 = vmax.f32 %v793_v6, 0.0 }
 0x193   :  { %v860_v12 = vmax.f32 %v795_v8, 0.0 }
 0x194   :  { %v923_v15 = vpack.c.bf16 %v859_v10, %v855_v9 }
 0x195   :  { %v924_v54 = vpack.c.bf16 %v860_v12, %v856_v11 }
 0x197   :  { %1524 = vmatprep.mubr.bf16.mxu0 %v924_v54 }
 0x198   :  { %1525 = vmatmul.mubr.bf16.gmra.mrb[28].mxu0 %v923_v15 }
 0x233   :  { %v1456_v17 = vpop.f32.mrb[0].mxu0 }
 0x234   :  { %v1535_v18 = vadd.f32 %v1456_v17, %v2710_v55  ;;  %v1458_v19 = vpop.f32.mrb[1].mxu0 }
 0x235   :  { %v1536_v20 = vadd.f32 %v1458_v19, %v2714_v14  ;;  %v1460_v21 = vpop.f32.mrb[2].mxu0 }
 0x236   :  { %1634 = vst [vmem:[#allocation3] sm:$0xff] %v1535_v18  ;;  %v1537_v22 = vadd.f32 %v1460_v21, %v2710_v55  ;;  %v1462_v23 = vpop.f32.mrb[3].mxu0 }
 0x237   :  { %1635 = vst [vmem:[#allocation3 + $0x8] sm:$0xff] %v1536_v20  ;;  %v1538_v24 = vadd.f32 %v1462_v23, %v2714_v14 }
 0x238   :  { %1636 = vst [vmem:[#allocation3 + $0x10] sm:$0xff] %v1537_v22 }
 0x239   :  { %1637 = vst [vmem:[#allocation3 + $0x18] sm:$0xff] %v1538_v24 }
 0x23b   :  { %v1466_v51 = vpop.f32.mrb[4].mxu0 }
 0x23c   :  { %v1539_v50 = vadd.f32 %v1466_v51, %v2710_v55  ;;  %v1468_v53 = vpop.f32.mrb[5].mxu0 }
 0x23d   :  { %v1540_v52 = vadd.f32 %v1468_v53, %v2714_v14  ;;  %v1470_v25 = vpop.f32.mrb[6].mxu0 }
 0x23e   :  { %1638 = vst [vmem:[#allocation3 + $0x20] sm:$0xff] %v1539_v50  ;;  %v1541_v26 = vadd.f32 %v1470_v25, %v2710_v55  ;;  %v1472_v27 = vpop.f32.mrb[7].mxu0 }
 0x23f   :  { %1639 = vst [vmem:[#allocation3 + $0x28] sm:$0xff] %v1540_v52  ;;  %v1542_v28 = vadd.f32 %v1472_v27, %v2714_v14 }
 0x240   :  { %1640 = vst [vmem:[#allocation3 + $0x30] sm:$0xff] %v1541_v26 }
 0x241   :  { %1641 = vst [vmem:[#allocation3 + $0x38] sm:$0xff] %v1542_v28 }
 0x243   :  { %v1476_v29 = vpop.f32.mrb[8].mxu0 }
 0x244   :  { %v1543_v30 = vadd.f32 %v1476_v29, %v2710_v55  ;;  %v1478_v31 = vpop.f32.mrb[9].mxu0 }
 0x245   :  { %v1544_v32 = vadd.f32 %v1478_v31, %v2714_v14  ;;  %v1480_v33 = vpop.f32.mrb[10].mxu0 }
 0x246   :  { %1642 = vst [vmem:[#allocation3 + $0x40] sm:$0xff] %v1543_v30  ;;  %v1545_v34 = vadd.f32 %v1480_v33, %v2710_v55  ;;  %v1482_v35 = vpop.f32.mrb[11].mxu0 }
 0x247   :  { %1643 = vst [vmem:[#allocation3 + $0x48] sm:$0xff] %v1544_v32  ;;  %v1546_v36 = vadd.f32 %v1482_v35, %v2714_v14 }
 0x248   :  { %1644 = vst [vmem:[#allocation3 + $0x50] sm:$0xff] %v1545_v34 }
 0x249   :  { %1645 = vst [vmem:[#allocation3 + $0x58] sm:$0xff] %v1546_v36 }
 0x24b   :  { %v1486_v37 = vpop.f32.mrb[12].mxu0 }
 0x24c   :  { %v1547_v39 = vadd.f32 %v1486_v37, %v2710_v55  ;;  %v1488_v40 = vpop.f32.mrb[13].mxu0 }
 0x24d   :  { %v1548_v42 = vadd.f32 %v1488_v40, %v2714_v14  ;;  %v1490_v43 = vpop.f32.mrb[14].mxu0 }
 0x24e   :  { %1646 = vst [vmem:[#allocation3 + $0x60] sm:$0xff] %v1547_v39  ;;  %v1549_v44 = vadd.f32 %v1490_v43, %v2710_v55  ;;  %v1492_v45 = vpop.f32.mrb[15].mxu0 }
 0x24f   :  { %1647 = vst [vmem:[#allocation3 + $0x68] sm:$0xff] %v1548_v42  ;;  %v1550_v47 = vadd.f32 %v1492_v45, %v2714_v14 }
 0x250   :  { %1648 = vst [vmem:[#allocation3 + $0x70] sm:$0xff] %v1549_v44 }
 0x251   :  { %1649 = vst [vmem:[#allocation3 + $0x78] sm:$0xff] %v1550_v47 }
 0x253   :  { %v1496_v13 = vpop.f32.mrb[16].mxu0 }
 0x254   :  { %v1551_v38 = vadd.f32 %v1496_v13, %v2710_v55  ;;  %v1498_v41 = vpop.f32.mrb[17].mxu0 }
 0x255   :  { %v1552_v46 = vadd.f32 %v1498_v41, %v2714_v14  ;;  %v1500_v48 = vpop.f32.mrb[18].mxu0 }
 0x256   :  { %1650 = vst [vmem:[#allocation3 + $0x80] sm:$0xff] %v1551_v38  ;;  %v1553_v49 = vadd.f32 %v1500_v48, %v2710_v55  ;;  %v1502_v56 = vpop.f32.mrb[19].mxu0 }
 0x257   :  { %1651 = vst [vmem:[#allocation3 + $0x88] sm:$0xff] %v1552_v46  ;;  %v1554_v57 = vadd.f32 %v1502_v56, %v2714_v14 }
 0x258   :  { %1652 = vst [vmem:[#allocation3 + $0x90] sm:$0xff] %v1553_v49 }
 0x259   :  { %1653 = vst [vmem:[#allocation3 + $0x98] sm:$0xff] %v1554_v57 }
 0x25b   :  { %v1506_v58 = vpop.f32.mrb[20].mxu0 }
 0x25c   :  { %v1555_v59 = vadd.f32 %v1506_v58, %v2710_v55  ;;  %v1508_v60 = vpop.f32.mrb[21].mxu0 }
 0x25d   :  { %v1556_v61 = vadd.f32 %v1508_v60, %v2714_v14  ;;  %v1510_v62 = vpop.f32.mrb[22].mxu0 }
 0x25e   :  { %1654 = vst [vmem:[#allocation3 + $0xa0] sm:$0xff] %v1555_v59  ;;  %v1557_v63 = vadd.f32 %v1510_v62, %v2710_v55  ;;  %v1512_v0 = vpop.f32.mrb[23].mxu0 }
 0x25f   :  { %1655 = vst [vmem:[#allocation3 + $0xa8] sm:$0xff] %v1556_v61  ;;  %v1558_v1 = vadd.f32 %v1512_v0, %v2714_v14 }
 0x260   :  { %1656 = vst [vmem:[#allocation3 + $0xb0] sm:$0xff] %v1557_v63 }
 0x261   :  { %1657 = vst [vmem:[#allocation3 + $0xb8] sm:$0xff] %v1558_v1 }
 0x263   :  { %v1516_v2 = vpop.f32.mrb[24].mxu0 }
 0x264   :  { %v1559_v3 = vadd.f32 %v1516_v2, %v2710_v55  ;;  %v1518_v4 = vpop.f32.mrb[25].mxu0 }
 0x265   :  { %v1560_v5 = vadd.f32 %v1518_v4, %v2714_v14  ;;  %v1520_v6 = vpop.f32.mrb[26].mxu0 }
 0x266   :  { %1658 = vst [vmem:[#allocation3 + $0xc0] sm:$0xff] %v1559_v3  ;;  %v1561_v7 = vadd.f32 %v1520_v6, %v2710_v55  ;;  %v1522_v8 = vpop.f32.mrb[27].mxu0 }
 0x267   :  { %1659 = vst [vmem:[#allocation3 + $0xc8] sm:$0xff] %v1560_v5  ;;  %v1562_v9 = vadd.f32 %v1522_v8, %v2714_v14 }
 0x268   :  { %1660 = vst [vmem:[#allocation3 + $0xd0] sm:$0xff] %v1561_v7 }
 0x269   :  { %1661 = vst [vmem:[#allocation3 + $0xd8] sm:$0xff] %v1562_v9 }
 0x26b   :  { %v1526_v10 = vpop.f32.mrb[28].mxu0 }
 0x26c   :  { %v1563_v11 = vadd.f32 %v1526_v10, %v2710_v55  ;;  %v1528_v12 = vpop.f32.mrb[29].mxu0 }
 0x26d   :  { %v1564_v15 = vadd.f32 %v1528_v12, %v2714_v14  ;;  %v1530_v54 = vpop.f32.mrb[30].mxu0 }
 0x26e   :  { %1662 = vst [vmem:[#allocation3 + $0xe0] sm:$0xff] %v1563_v11  ;;  %v1565_v16 = vadd.f32 %v1530_v54, %v2710_v55  ;;  %v1532_v17 = vpop.f32.mrb[31].mxu0 }
 0x26f   :  { %1663 = vst [vmem:[#allocation3 + $0xe8] sm:$0xff] %v1564_v15  ;;  %v1566_v18 = vadd.f32 %v1532_v17, %v2714_v14 }
 0x270   :  { %1664 = vst [vmem:[#allocation3 + $0xf0] sm:$0xff] %v1565_v16 }
 0x271   :  { %1665 = vst [vmem:[#allocation3 + $0xf8] sm:$0xff] %v1566_v18 }
 0x272   :  { %2088 = shalt.err (!%p2085_p4)
}
 0x273   :  { %s2089_s29 = scalar_lea.hbm %s2765_s5, 4096 }
 0x274   :  { %p2090_p5 = scmp.ne.s32.totalorder %s2765_s5, %s2089_s29  ;;  %p2093_p6 = scmp.lt.u32.totalorder %s2089_s29, %s2765_s5 }
 0x276   :  { %p2095_p7 = pnand %p2093_p6, %p2090_p5 }
 0x278   :  { %2098 = shalt.err (!%p2095_p7)
}
 0x279   :  { %s2102_s1 = smov 256   ;;  %s2103_s8 = smov 16  }
 0x27a   :  { %1677 = dma.vmem_to_hbm [thread:$0]  %s1672_s25, 4096, %s2765_s5, [#allocation4], %s2102_s1, %s2102_s1, %s2103_s8  }
 0x27b   :  { %2099 = dma.done.wait [#allocation4], 4096  }
 0x27c   :  { %2100 = vsyncadd [#allocation4], 4294963200 }
 0x27d   :  { %1681 = vsyncpa [#allocation4], 1 }

</bundles_post_ra>
